<compile_context>
chip_gen: v7x
topology: tpu7x:2x2x1
jax: 0.10.0
libtpu: 0.0.40
codegen_flags: <defaults>
</compile_context>

<pallas_src>
import math

import jax
import jax.numpy as jnp
from jax.experimental import pallas as pl
from jax.experimental.pallas import tpu as pltpu


# ----------------------------- kernel ---------------------------------------


def _ew_sum_kernel(x_ref, w_ref, b_ref, o_ref, acc_ref):
    # x_ref: (TB, TC, TF)   w_ref: (TC, TF)   b_ref: (1, TC)
    # o_ref: (TB, TC)       acc_ref: (TB, TC) f32 scratch
    k = pl.program_id(2)

    @pl.when(k == 0)
    def _init():
        acc_ref[...] = jnp.zeros_like(acc_ref)

    # Upcast to f32 before multiply (free here: the kernel is HBM-bandwidth bound).
    x = x_ref[...].astype(jnp.float32)
    w = w_ref[...].astype(jnp.float32)
    acc_ref[...] += jnp.sum(x * w[None, :, :], axis=2)   # VPU mul + XLU lane reduce

    @pl.when(k == pl.num_programs(2) - 1)
    def _finalize():
        o_ref[...] = (acc_ref[...] + b_ref[...].astype(jnp.float32)).astype(o_ref.dtype)


# --------------------------- tiling heuristics -------------------------------

_X_TILE_BYTES = 4 * 1024 * 1024   # ~4 MiB x tile: double-buffers fit v5e/v6e/v7x VMEM
_TC_FULL_MAX = 512                # keep full in_features per tile when modest
_TB_MIN = 8                       # minimum (sublane-aligned) batch tile when tiled


def _round_up(n, m):
    return (n + m - 1) // m * m


def _choose_tiles(B, C, F, itemsize):
    # C (in_features): lane axis of the output -> full extent when modest, else a
    # lane-aligned multiple of 128 that divides the (minimally) padded extent.
    if C <= _TC_FULL_MAX:
        tc, Cp = C, C
    else:
        Cp = _round_up(C, 128)
        tc = 128
        for cand in (512, 384, 256, 128):
            if Cp % cand == 0:
                tc = cand
                break
    # F (out_features): reduction axis, lane axis of x / weight blocks.
    if _TB_MIN * tc * F * itemsize <= _X_TILE_BYTES:
        tf, Fp = F, F                       # full extent: no 128-divisibility, no padding
    else:
        Fp = _round_up(F, 128)
        max_tf = max(128, (_X_TILE_BYTES // (_TB_MIN * tc * itemsize)) // 128 * 128)
        tf = 128
        for cand in range(max_tf, 127, -128):
            if Fp % cand == 0:
                tf = cand
                break
    # B: grow the batch tile to fill the ~4 MiB x-tile budget (multiple of 8 when tiled).
    tb_budget = max(_TB_MIN, (_X_TILE_BYTES // (tc * tf * itemsize)) // _TB_MIN * _TB_MIN)
    if B <= tb_budget:
        tb, Bp = B, B
    else:
        tb = tb_budget
        Bp = _round_up(B, tb)
    return tb, tc, tf, Bp, Cp, Fp


# ------------------------------ wrapper --------------------------------------


def element_wise_layer(x, weight, bias=None, *, use_kernel=True):
    """x: (B, C, F); weight: (C, F); bias: (C,) or None.
    Returns (out (B, C), weight) — same as the PyTorch module's forward."""
    B, C, F = x.shape
    assert weight.shape == (C, F)
    dtype = x.dtype
    bias_arr = bias if bias is not None else jnp.zeros((C,), dtype=dtype)

    if not use_kernel:   # tiny-problem escape hatch (kernel/grid overhead dominates)
        out = jnp.sum(x * weight[None, :, :], axis=2) + bias_arr[None, :]
        return out, weight

    itemsize = jnp.dtype(dtype).itemsize
    tb, tc, tf, Bp, Cp, Fp = _choose_tiles(B, C, F, itemsize)

    # Zero-pad only when a dim must be tiled and is not an exact multiple (zeros
    # contribute nothing to the reduction; padded output rows/cols are sliced away).
    xp, wp, bp = x, weight, bias_arr
    if (Bp, Cp, Fp) != (B, C, F):
        xp = jnp.pad(x, ((0, Bp - B), (0, Cp - C), (0, Fp - F)))
        wp = jnp.pad(weight, ((0, Cp - C), (0, Fp - F)))
        bp = jnp.pad(bias_arr, ((0, Cp - C),))
    b2d = bp.reshape(1, Cp)

    # (C tiles, B tiles, F reduction) — batch is the middle axis so the weight block is
    # reused across the inner reduction loop; reduction axis trailing per convention.
    grid = (Cp // tc, Bp // tb, Fp // tf)

    out_p = pl.pallas_call(
        _ew_sum_kernel,
        out_shape=jax.ShapeDtypeStruct((Bp, Cp), dtype),
        grid_spec=pltpu.PrefetchScalarGridSpec(
            num_scalar_prefetch=0,
            grid=grid,
            in_specs=[
                pl.BlockSpec((tb, tc, tf), lambda j, i, k: (i, j, k)),  # x
                pl.BlockSpec((tc, tf), lambda j, i, k: (j, k)),          # weight
                pl.BlockSpec((1, tc), lambda j, i, k: (0, j)),           # bias
            ],
            out_specs=pl.BlockSpec((tb, tc), lambda j, i, k: (i, j)),
            scratch_shapes=[pltpu.VMEM((tb, tc), jnp.float32)],
        ),
        compiler_params=pltpu.CompilerParams(
            dimension_semantics=("parallel", "parallel", "arbitrary"),
            vmem_limit_bytes=32 * 1024 * 1024,
        ),
    )(xp, wp, b2d)

    out = out_p[:B, :C] if (Bp, Cp) != (B, C) else out_p
    return out, weight


# -------------------------------- demo ---------------------------------------

if __name__ == "__main__":
    key = jax.random.PRNGKey(0)

    def _make_inputs(k, B, C, F):
        kx, kw, kb = jax.random.split(k, 3)
        stdv = 1.0 / math.sqrt(F)  # matches reset_parameters: U(-stdv, stdv)
        weight = jax.random.uniform(kw, (C, F), minval=-stdv, maxval=stdv,
                                    dtype=jnp.float32)
        bias = jax.random.uniform(kb, (C,), minval=-stdv, maxval=stdv,
                                  dtype=jnp.float32)
        x = jax.random.normal(kx, (B, C, F), dtype=jnp.float32)
        return x, weight, bias

    shapes = [
        (2, 8, 32),        # module demo shape (single-tile grid)
        (24, 200, 1280),   # batch tiling + multi-step F reduction (no padding)
        (4, 640, 256),     # C tiling with lane-dense 128-wide output blocks
    ]
    keys = jax.random.split(key, len(shapes))
    for kk, (B, C, F) in zip(keys, shapes):
        x, weight, bias = _make_inputs(kk, B, C, F)
        out, w_out = element_wise_layer(x, weight, bias)
        out = jax.block_until_ready(out)
        w_out = jax.block_until_ready(w_out)

        ref = jnp.sum(x * weight[None, :, :], axis=2) + bias[None, :]
        assert out.shape == (B, C), (out.shape, (B, C))
        assert w_out.shape == (C, F)
        assert jnp.allclose(out, ref, atol=1e-4, rtol=1e-4), (B, C, F)
        assert jnp.array_equal(w_out, weight)

    # bias=None path (module supports bias=False)
    x, weight, _ = _make_inputs(keys[0], 2, 8, 32)
    out_nb, _ = element_wise_layer(x, weight, None)
    out_nb = jax.block_until_ready(out_nb)
    ref_nb = jnp.sum(x * weight[None, :, :], axis=2)
    assert jnp.allclose(out_nb, ref_nb, atol=1e-5, rtol=1e-5)

    print("KERNEL_OK")
</pallas_src>

<mosaic_0001>
module attributes {stable_mosaic.version = 11 : i64} {
  func.func @_ew_sum_kernel(%arg0: i32, %arg1: i32, %arg2: i32, %arg3: memref<2x8x32xf32, #tpu.memory_space<vmem>>, %arg4: memref<8x32xf32, #tpu.memory_space<vmem>>, %arg5: memref<1x8xf32, #tpu.memory_space<vmem>>, %arg6: memref<2x8xf32, #tpu.memory_space<vmem>>, %arg7: memref<2x8xf32, #tpu.memory_space<vmem>>) attributes {dimension_semantics = [#tpu.dimension_semantics<parallel>, #tpu.dimension_semantics<parallel>, #tpu.dimension_semantics<arbitrary>], iteration_bounds = array<i64: 1, 1, 1>, scalar_prefetch = 0 : i64, scratch_operands = 1 : i64, tpu.core_type = #tpu.core_type<tc>, window_params = [{transform_indices = @transform_0, window_bounds = array<i64: 2, 8, 32>}, {transform_indices = @transform_1, window_bounds = array<i64: 8, 32>}, {transform_indices = @transform_2, window_bounds = array<i64: 1, 8>}, {transform_indices = @transform_3, window_bounds = array<i64: 2, 8>}]} {
    %c0_i32 = arith.constant 0 : i32
    %0 = arith.cmpi eq, %arg2, %c0_i32 : i32
    %1 = arith.extui %0 : i1 to i32
    %c0_i32_0 = arith.constant 0 : i32
    %2 = arith.cmpi ne, %1, %c0_i32_0 : i32
    scf.if %2 {
      %cst_11 = arith.constant 0.000000e+00 : f32
      %15 = vector.broadcast %cst_11 : f32 to vector<2x8xf32>
      %c0_12 = arith.constant 0 : index
      %c0_13 = arith.constant 0 : index
      %16 = vector.load %arg7[%c0_12, %c0_13] : memref<2x8xf32, #tpu.memory_space<vmem>>, vector<2x8xf32>
      tpu.vector_store %arg7[%c0_12, %c0_13], %15 {strides = array<i32>} : memref<2x8xf32, #tpu.memory_space<vmem>>, vector<2x8xf32>,
    } else {
    }
    %c0 = arith.constant 0 : index
    %c0_1 = arith.constant 0 : index
    %c0_2 = arith.constant 0 : index
    %3 = vector.load %arg3[%c0, %c0_1, %c0_2] : memref<2x8x32xf32, #tpu.memory_space<vmem>>, vector<2x8x32xf32>
    %c0_3 = arith.constant 0 : index
    %c0_4 = arith.constant 0 : index
    %4 = vector.load %arg4[%c0_3, %c0_4] : memref<8x32xf32, #tpu.memory_space<vmem>>, vector<8x32xf32>
    %c0_5 = arith.constant 0 : index
    %c0_6 = arith.constant 0 : index
    %5 = vector.load %arg7[%c0_5, %c0_6] : memref<2x8xf32, #tpu.memory_space<vmem>>, vector<2x8xf32>
    %6 = vector.shape_cast %4 : vector<8x32xf32> to vector<1x8x32xf32>
    %7 = vector.broadcast %6 : vector<1x8x32xf32> to vector<2x8x32xf32>
    %8 = arith.mulf %3, %7 : vector<2x8x32xf32>
    %cst = arith.constant dense<0.000000e+00> : vector<2x8xf32>
    %9 = vector.multi_reduction <add>, %8, %cst [2] : vector<2x8x32xf32> to vector<2x8xf32>
    %10 = arith.addf %5, %9 : vector<2x8xf32>
    %c0_7 = arith.constant 0 : index
    %c0_8 = arith.constant 0 : index
    %11 = vector.load %arg7[%c0_7, %c0_8] : memref<2x8xf32, #tpu.memory_space<vmem>>, vector<2x8xf32>
    tpu.vector_store %arg7[%c0_7, %c0_8], %10 {strides = array<i32>} : memref<2x8xf32, #tpu.memory_space<vmem>>, vector<2x8xf32>,
    %c0_i32_9 = arith.constant 0 : i32
    %12 = arith.cmpi eq, %arg2, %c0_i32_9 : i32
    %13 = arith.extui %12 : i1 to i32
    %c0_i32_10 = arith.constant 0 : i32
    %14 = arith.cmpi ne, %13, %c0_i32_10 : i32
    scf.if %14 {
      %c0_11 = arith.constant 0 : index
      %c0_12 = arith.constant 0 : index
      %15 = vector.load %arg7[%c0_11, %c0_12] : memref<2x8xf32, #tpu.memory_space<vmem>>, vector<2x8xf32>
      %c0_13 = arith.constant 0 : index
      %c0_14 = arith.constant 0 : index
      %16 = vector.load %arg5[%c0_13, %c0_14] : memref<1x8xf32, #tpu.memory_space<vmem>>, vector<1x8xf32>
      %17 = vector.broadcast %16 : vector<1x8xf32> to vector<2x8xf32>
      %18 = arith.addf %15, %17 : vector<2x8xf32>
      %c0_15 = arith.constant 0 : index
      %c0_16 = arith.constant 0 : index
      %19 = vector.load %arg6[%c0_15, %c0_16] : memref<2x8xf32, #tpu.memory_space<vmem>>, vector<2x8xf32>
      tpu.vector_store %arg6[%c0_15, %c0_16], %18 {strides = array<i32>} : memref<2x8xf32, #tpu.memory_space<vmem>>, vector<2x8xf32>,
    } else {
    }
    return
  }
  func.func @transform_0(%arg0: i32, %arg1: i32, %arg2: i32) -> (i32, i32, i32) {
    %c0_i32 = arith.constant 0 : i32
    return %arg1, %arg0, %arg2 : i32, i32, i32
  }
  func.func @transform_1(%arg0: i32, %arg1: i32, %arg2: i32) -> (i32, i32) {
    %c0_i32 = arith.constant 0 : i32
    return %arg0, %arg2 : i32, i32
  }
  func.func @transform_2(%arg0: i32, %arg1: i32, %arg2: i32) -> (i32, i32) {
    %c0_i32 = arith.constant 0 : i32
    %c0_i32_0 = arith.constant 0 : i32
    return %c0_i32, %arg0 : i32, i32
  }
  func.func @transform_3(%arg0: i32, %arg1: i32, %arg2: i32) -> (i32, i32) {
    %c0_i32 = arith.constant 0 : i32
    return %arg1, %arg0 : i32, i32
  }
}

</mosaic_0001>

<bundles_post_ra>
// kernel: tpu_custom_call.1
= control target key start
LH: loop header
LB: loop body
LE: loop exit
PB: predicated region body
PF: predicated region fallthrough
CT: control target
= control target key end

     0   :  { %8 = vsyncpa [#allocation4], 0  ;;  %s254_s0 = inlined_call_operand.hbm [shape: f32[2,8,32], index: 0, kind: input, shape index: {}]   ;;  %s255_s1 = inlined_call_operand.hbm [shape: f32[8,32], index: 1, kind: input, shape index: {}]   ;;  %s256_s2 = inlined_call_operand.vmem [shape: f32[1,8], index: 2, kind: input, shape index: {}]   ;;  %s257_s3 = inlined_call_operand.hbm [shape: f32[2,8], index: 3, kind: output, shape index: {}]  }
   0x1   :  { %9 = vsyncpa [#allocation7], 0 }
   0x2   :  { %10 = vsyncpa [#allocation5], 0  ;;  %s186_s12 = smov [#allocation3]   ;;  %s114_s16 = scalar_lea.hbm %s254_s0, 256 }
   0x3   :  { %s16_s13 = sshll.u32 %s186_s12, 4  ;;  %p115_p0 = scmp.ne.s32.totalorder %s254_s0, %s114_s16  ;;  %s17_s13 = int_to_ptr.vmem [resolvable:$true] %s16_s13 }
   0x4   :  { %p118_p1 = scmp.lt.u32.totalorder %s114_s16, %s254_s0 }
   0x6   :  { %p120_p2 = pnand %p118_p1, %p115_p0 }
   0x8   :  { %123 = shalt.err (!%p120_p2)
}
   0x9   :  { %s124_s21 = scalar_lea.vmem %s17_s13, 256  ;;  %p129_p4 = scmp.lt.s32.totalorder %s17_s13, %s17_s13 }
   0xa   :  { %p125_p3 = scmp.ne.s32.totalorder %s17_s13, %s124_s21  ;;  %p130_p5 = scmp.lt.s32.totalorder %s124_s21, %s124_s21 }
   0xc   :  { %p131_p6 = por %p130_p5, %p129_p4 }
   0xe   :  { %p132_p7 = pnand %p131_p6, %p125_p3 }
  0x10   :  { %135 = shalt.err (!%p132_p7)
}
  0x11   :  { %s187_s22 = smov 128   ;;  %s188_s23 = smov 8  }
  0x12   :  { %22 = dma.hbm_to_vmem [thread:$0]  %s254_s0, 256, %s17_s13, [#allocation4], %s187_s22, %s187_s22, %s188_s23  }
  0x13   :  { %s189_s26 = smov [#allocation6]   ;;  %s136_s30 = scalar_lea.hbm %s255_s1, 128 }
  0x14   :  { %s29_s27 = sshll.u32 %s189_s26, 4  ;;  %p137_p8 = scmp.ne.s32.totalorder %s255_s1, %s136_s30  ;;  %s30_s27 = int_to_ptr.vmem [resolvable:$true] %s29_s27 }
  0x15   :  { %p140_p9 = scmp.lt.u32.totalorder %s136_s30, %s255_s1 }
  0x17   :  { %p142_p10 = pnand %p140_p9, %p137_p8 }
  0x19   :  { %145 = shalt.err (!%p142_p10)
}
  0x1a   :  { %s146_s8 = scalar_lea.vmem %s30_s27, 128  ;;  %p151_p12 = scmp.lt.s32.totalorder %s30_s27, %s30_s27 }
  0x1b   :  { %p147_p11 = scmp.ne.s32.totalorder %s30_s27, %s146_s8  ;;  %p152_p13 = scmp.lt.s32.totalorder %s146_s8, %s146_s8 }
  0x1d   :  { %p153_p0 = por %p152_p13, %p151_p12 }
  0x1f   :  { %p154_p1 = pnand %p153_p0, %p147_p11 }
  0x21   :  { %157 = shalt.err (!%p154_p1)
}
  0x22   :  { %32 = dma.hbm_to_vmem [thread:$0]  %s255_s1, 128, %s30_s27, [#allocation7]  }
  0x23   :  { %180 = dma.done.wait [#allocation4], 256  }
  0x24   :  { %181 = vsyncadd [#allocation4], 4294967040 }
  0x25   :  { %182 = dma.done.wait [#allocation7], 128  }
  0x26   :  { %183 = vsyncadd [#allocation7], 4294967168  ;;  %v47_v0 = vld [vmem:[#allocation3] sm:$0xff]  ;;  %v49_v1 = vld [vmem:[#allocation6] sm:$0xff]  ;;  %vm53_vm0 = vcmask 261120   ;;  %vm45_vm1 = vcmask 58368   ;;  %v62_v8 = vlaneseq }
  0x27   :  { %v48_v2 = vld [vmem:[#allocation3 + $0x8] sm:$0xff]  ;;  %v51_v3 = vmul.f32 %v49_v1, %v47_v0  ;;  %v190_v7 = vmov 0.0   ;;  %vm72_vm2 = vcmask 1041409   ;;  %v107_v19 = vld [vmem:[%s256_s2] ss:$0 sm:$0xff]  ;;  %s191_s11 = smov [#allocation8]  }
  0x28   :  { %v52_v4 = vmul.f32 %v49_v1, %v48_v2  ;;  %46 = vst.msk [vmem:[#allocation2] sm:$0x3] %vm45_vm1, %v190_v7  ;;  %v63_v9 = vand.u32 127, %v62_v8  ;;  %v65_v10 = vshrl.u32 %v62_v8, 7  ;;  %s97_s12 = sshll.u32 %s191_s11, 4  ;;  %s98_s12 = int_to_ptr.vmem [resolvable:$true] %s97_s12 }
  0x29   :  { %v54_v5 = vsel %vm53_vm0, %v51_v3, 0.0  ;;  %s158_s13 = scalar_lea.vmem %s98_s12, 32  ;;  %p163_p3 = scmp.lt.s32.totalorder %s98_s12, %s98_s12 }
  0x2a   :  { %55 = vadd.xlane.f32.xlu0 %v54_v5  ;;  %v57_v6 = vsel %vm53_vm0, %v52_v4, 0.0  ;;  %v66_v12 = vsub.s32 %v63_v9, %v65_v10  ;;  %p159_p2 = scmp.ne.s32.totalorder %s98_s12, %s158_s13  ;;  %p164_p4 = scmp.lt.s32.totalorder %s158_s13, %s158_s13 }
  0x2c   :  { %p165_p5 = por %p164_p4, %p163_p3 }
  0x2e   :  { %58 = vadd.xlane.f32.xlu0 %v57_v6  ;;  %p166_p6 = pnand %p165_p5, %p159_p2 }
  0x2f   :  { %v50_v16 = vld [vmem:[#allocation2] sm:$0x3] }
  0xb7   :  { %v56_v11 = vpop.xlane.xlu0 %55 }
  0xb8   :  { %v67_v14 = vrot.slane %v56_v11, %v66_v12 }
  0xbb   :  { %v59_v13 = vpop.xlane.xlu0 %58 }
  0xbc   :  { %v71_v15 = vrot.slane %v59_v13, %v66_v12 }
  0xbe   :  { %v73_v17 = vsel %vm72_vm2, %v71_v15, %v67_v14 }
  0xbf   :  { %v75_v18 = vadd.f32 %v73_v17, %v50_v16 }
  0xc1   :  { %77 = vst.msk [vmem:[#allocation2] sm:$0x3] %vm45_vm1, %v75_v18 }
  0xc8   :  { %v81_v20 = vld [vmem:[#allocation2] sm:$0x3] }
  0xc9   :  { %v89_v21 = vadd.f32 %v107_v19, %v81_v20 }
  0xcb   :  { %90 = vst.msk [vmem:[#allocation8] sm:$0x3] %vm45_vm1, %v89_v21 }
  0xcc   :  { %169 = shalt.err (!%p166_p6)
}
  0xcd   :  { %s170_s16 = scalar_lea.hbm %s257_s3, 32 }
  0xce   :  { %p171_p7 = scmp.ne.s32.totalorder %s257_s3, %s170_s16  ;;  %p174_p8 = scmp.lt.u32.totalorder %s170_s16, %s257_s3 }
  0xd0   :  { %p176_p9 = pnand %p174_p8, %p171_p7 }
  0xd2   :  { %179 = shalt.err (!%p176_p9)
}
  0xd3   :  { %100 = dma.vmem_to_hbm [thread:$0]  %s98_s12, 32, %s257_s3, [#allocation5]  }
  0xd4   :  { %184 = dma.done.wait [#allocation5], 32  }
  0xd5   :  { %185 = vsyncadd [#allocation5], 4294967264 }
  0xd6   :  { %104 = vsyncpa [#allocation4], 1 }
  0xd7   :  { %105 = vsyncpa [#allocation7], 1 }
  0xd8   :  { %106 = vsyncpa [#allocation5], 1 }

</bundles_post_ra>
